<compile_context>
chip_gen: v5e
topology: v5e:2x2
jax: 0.10.0
libtpu: 0.0.40
codegen_flags: <defaults>
</compile_context>

<pallas_src>
import jax
import jax.numpy as jnp
from jax.experimental import pallas as pl
from jax.experimental.pallas import tpu as pltpu


def _glu_kernel(x_ref, o_ref):
    x = x_ref[...].astype(jnp.float32)
    # sigmoid(x) = 0.5 * (tanh(0.5 * x) + 1): single EUP push per element
    sig = 0.5 * (jnp.tanh(0.5 * x) + 1.0)
    o_ref[...] = (x * sig).astype(o_ref.dtype)


def glu(x: jax.Array, *, target_block_bytes: int = 2 * 1024 * 1024) -> jax.Array:
    """Elementwise x * sigmoid(x), matching the PyTorch GLU.forward above."""
    orig_shape = x.shape
    dtype = x.dtype
    total = x.size
    itemsize = jnp.dtype(dtype).itemsize

    LANE = 128
    SUBLANE = 8

    # Pick the widest lane dimension (multiple of 128) that divides the total
    # element count — avoids any padding and gives unmasked full-width stores.
    cols = 0
    for c in (2048, 1024, 512, 256, 128):
        if total % c == 0:
            cols = c
            break

    if cols:
        rows = total // cols
        pad_total = total
        x2d = x.reshape(rows, cols)
    else:
        # Ragged fallback: pad flat array up to a (multiple-of-8, 128) slab.
        cols = LANE
        rows = pl.cdiv(total, cols)
        rows = pl.cdiv(rows, SUBLANE) * SUBLANE
        pad_total = rows * cols
        x2d = jnp.pad(x.reshape(-1), (0, pad_total - total)).reshape(rows, cols)

    # Block rows: as many as fit the per-buffer byte budget, multiple of 8.
    max_block_rows = max(
        SUBLANE, (target_block_bytes // (cols * itemsize)) // SUBLANE * SUBLANE
    )
    if rows <= max_block_rows:
        # Single full-array block (satisfies the (8,128) rule via full dims).
        block_rows = rows
    else:
        block_rows = max_block_rows

    grid = (pl.cdiv(rows, block_rows),)

    out2d = pl.pallas_call(
        _glu_kernel,
        out_shape=jax.ShapeDtypeStruct((rows, cols), dtype),
        grid_spec=pltpu.PrefetchScalarGridSpec(
            num_scalar_prefetch=0,
            grid=grid,
            in_specs=[pl.BlockSpec((block_rows, cols), lambda i: (i, 0))],
            out_specs=pl.BlockSpec((block_rows, cols), lambda i: (i, 0)),
        ),
        compiler_params=pltpu.CompilerParams(
            dimension_semantics=("parallel",),
            vmem_limit_bytes=32 * 1024 * 1024,
        ),
    )(x2d)

    if pad_total != total:
        return out2d.reshape(-1)[:total].reshape(orig_shape)
    return out2d.reshape(orig_shape)


if __name__ == "__main__":
    key = jax.random.PRNGKey(0)
    # Small NCHW input consistent with the GAN usage of this module.
    x = jax.random.normal(key, (2, 4, 16, 16), dtype=jnp.float32)

    out = glu(x)
    out = jax.block_until_ready(out)

    # Correctness check against plain-JAX reference (torch: input * sigmoid(input)).
    ref = x * jax.nn.sigmoid(x)
    assert out.shape == x.shape and out.dtype == x.dtype
    assert jnp.allclose(out, ref, atol=1e-5, rtol=1e-5)

    # Also exercise a larger, multi-block case to cover the tiled path.
    x_big = jax.random.normal(jax.random.PRNGKey(1), (4, 64, 64, 64), dtype=jnp.float32)
    out_big = jax.block_until_ready(glu(x_big))
    ref_big = x_big * jax.nn.sigmoid(x_big)
    assert jnp.allclose(out_big, ref_big, atol=1e-5, rtol=1e-5)

    print("KERNEL_OK")
</pallas_src>

<mosaic_0001>
module attributes {stable_mosaic.version = 11 : i64} {
  func.func @_glu_kernel(%arg0: i32, %arg1: memref<1x2048xf32, #tpu.memory_space<vmem>>, %arg2: memref<1x2048xf32, #tpu.memory_space<vmem>>) attributes {dimension_semantics = [#tpu.dimension_semantics<parallel>], iteration_bounds = array<i64: 1>, scalar_prefetch = 0 : i64, scratch_operands = 0 : i64, tpu.core_type = #tpu.core_type<tc>, window_params = [{transform_indices = @transform_0, window_bounds = array<i64: 1, 2048>}, {transform_indices = @transform_1, window_bounds = array<i64: 1, 2048>}]} {
    %c0 = arith.constant 0 : index
    %c0_0 = arith.constant 0 : index
    %0 = vector.load %arg1[%c0, %c0_0] : memref<1x2048xf32, #tpu.memory_space<vmem>>, vector<1x2048xf32>
    %cst = arith.constant 5.000000e-01 : f32
    %1 = vector.broadcast %cst : f32 to vector<1x2048xf32>
    %2 = arith.mulf %1, %0 : vector<1x2048xf32>
    %3 = math.tanh %2 : vector<1x2048xf32>
    %cst_1 = arith.constant 1.000000e+00 : f32
    %4 = vector.broadcast %cst_1 : f32 to vector<1x2048xf32>
    %5 = arith.addf %3, %4 : vector<1x2048xf32>
    %cst_2 = arith.constant 5.000000e-01 : f32
    %6 = vector.broadcast %cst_2 : f32 to vector<1x2048xf32>
    %7 = arith.mulf %6, %5 : vector<1x2048xf32>
    %8 = arith.mulf %0, %7 : vector<1x2048xf32>
    %c0_3 = arith.constant 0 : index
    %c0_4 = arith.constant 0 : index
    %9 = vector.load %arg2[%c0_3, %c0_4] : memref<1x2048xf32, #tpu.memory_space<vmem>>, vector<1x2048xf32>
    tpu.vector_store %arg2[%c0_3, %c0_4], %8 {strides = array<i32>} : memref<1x2048xf32, #tpu.memory_space<vmem>>, vector<1x2048xf32>,
    return
  }
  func.func @transform_0(%arg0: i32) -> (i32, i32) {
    %c0_i32 = arith.constant 0 : i32
    %c0_i32_0 = arith.constant 0 : i32
    return %arg0, %c0_i32 : i32, i32
  }
  func.func @transform_1(%arg0: i32) -> (i32, i32) {
    %c0_i32 = arith.constant 0 : i32
    %c0_i32_0 = arith.constant 0 : i32
    return %arg0, %c0_i32 : i32, i32
  }
}

</mosaic_0001>

<bundles_post_ra>
// kernel: tpu_custom_call.1
= control target key start
LH: loop header
LB: loop body
LE: loop exit
PB: predicated region body
PF: predicated region fallthrough
CT: control target
= control target key end

     0   :  { %6 = vsyncpa [#allocation3], 0  ;;  %s130_s0 = inlined_call_operand.hbm [shape: f32[1,2048], index: 0, kind: input, shape index: {}]   ;;  %s131_s1 = inlined_call_operand.hbm [shape: f32[1,2048], index: 1, kind: output, shape index: {}]  }
   0x1   :  { %7 = vsyncpa [#allocation4], 0  ;;  %s13_s8 = sshll.u32 %s130_s0, 4  ;;  %s112_s9 = smov [#allocation2]   ;;  %s14_s8 = int_to_ptr.hbm [resolvable:$true] %s13_s8 }
   0x2   :  { %s15_s10 = sshll.u32 %s112_s9, 4  ;;  %s16_s10 = int_to_ptr.vmem [resolvable:$true] %s15_s10 }
   0x3   :  { %18 = dma.hbm_to_vmem [thread:$0]  %s14_s8, 256, %s16_s10, [#allocation3]  }
   0x4   :  { %108 = dma.done.wait [#allocation3], 256  }
   0x5   :  { %109 = vsyncadd [#allocation3], 4294967040  ;;  %v23_v0 = vld [vmem:[#allocation2] sm:$0xff]  ;;  %v24_v1 = vld [vmem:[#allocation2 + $0x8] sm:$0xff]  ;;  %s113_s11 = smov [#allocation5]   ;;  %s44_s14 = sshll.u32 %s131_s1, 4  ;;  %s45_s14 = int_to_ptr.hbm [resolvable:$true] %s44_s14 }
   0x6   :  { %v25_v2 = vmul.f32 0.5, %v23_v0  ;;  %v26_v3 = vmul.f32 0.5, %v24_v1  ;;  %s42_s0 = sshll.u32 %s113_s11, 4  ;;  %s43_s0 = int_to_ptr.vmem [resolvable:$true] %s42_s0 }
   0x8   :  { %56 = vtanh.f32 %v25_v2 }
   0x9   :  { %58 = vtanh.f32 %v26_v3 }
   0xe   :  { %v57_v4 = vpop.eup %56 }
   0xf   :  { %v59_v5 = vpop.eup %58  ;;  %v29_v6 = vadd.f32 1.0, %v57_v4 }
  0x10   :  { %v30_v7 = vadd.f32 1.0, %v59_v5 }
  0x11   :  { %v31_v8 = vmul.f32 0.5, %v29_v6 }
  0x12   :  { %v32_v9 = vmul.f32 0.5, %v30_v7 }
  0x13   :  { %v33_v10 = vmul.f32 %v31_v8, %v23_v0 }
  0x14   :  { %v34_v11 = vmul.f32 %v32_v9, %v24_v1 }
  0x15   :  { %35 = vst [vmem:[#allocation5] sm:$0xff] %v33_v10 }
  0x16   :  { %36 = vst [vmem:[#allocation5 + $0x8] sm:$0xff] %v34_v11 }
  0x17   :  { %47 = dma.vmem_to_hbm [thread:$0]  %s43_s0, 256, %s45_s14, [#allocation4]  }
  0x18   :  { %110 = dma.done.wait [#allocation4], 256  }
  0x19   :  { %111 = vsyncadd [#allocation4], 4294967040 }
  0x1a   :  { %52 = vsyncpa [#allocation3], 1 }
  0x1b   :  { %53 = vsyncpa [#allocation4], 1 }

</bundles_post_ra>
